<compile_context>
chip_gen: v7x
topology: tpu7x:2x2x1
jax: 0.10.0
libtpu: 0.0.40
codegen_flags: <defaults>
</compile_context>

<pallas_src>
import jax
import jax.numpy as jnp
from jax.experimental import pallas as pl
from jax.experimental.pallas import tpu as pltpu


def _softmax_last(x):
    # Row softmax in f32 over the lane (last) axis.
    m = jnp.max(x, axis=-1, keepdims=True)
    e = jnp.exp(x - m)
    return e / jnp.sum(e, axis=-1, keepdims=True)


def _dot_kernel(hid_ref, enc_ref, out_ref):
    # hid: (Bt, H) f32   enc: (T, Bt, H)   out: (Bt, T) f32
    hid = hid_ref[...]
    scores_tb = jnp.sum(enc_ref[...] * hid[None, :, :], axis=-1)    # (T, Bt) f32
    out_ref[...] = _softmax_last(scores_tb.T)                       # (Bt, T)


def _concat_kernel(hpart_ref, enc_ref, we_ref, v_ref, out_ref):
    # hpart = hid @ Wh^T + b precomputed per batch row in the wrapper.
    # energy = tanh(E @ We^T + hpart); score = energy . v
    T, Bt, H = enc_ref.shape
    enc = enc_ref[...]
    # Layout-preserving reshape: Bt is a multiple of the sublane granule, so
    # merging (T, Bt) does not cross (8,128)/(16,128) tile boundaries (no copy).
    epart = jnp.dot(enc.reshape(T * Bt, H), we_ref[...],
                    preferred_element_type=jnp.float32).reshape(T, Bt, H)
    energy = jnp.tanh(epart + hpart_ref[...][None, :, :])           # (T, Bt, H) f32
    scores_tb = jnp.sum(energy * v_ref[...][None, :, :], axis=-1)   # (T, Bt)
    out_ref[...] = _softmax_last(scores_tb.T)                       # (Bt, T)


def _pick_b_tile(B, T, H, enc_itemsize, granule, vmem_budget_bytes):
    """Largest batch tile (multiple of `granule`) that fits the VMEM budget
    while keeping >= ~4 grid steps so the pipeline / megacore stay busy."""
    # Steady-state VMEM per batch row: double-buffered enc tile plus ~3 f32
    # (T, H) temporaries (product / epart / energy paths).
    per_row = T * H * (2 * enc_itemsize + 3 * 4)
    cap = max(granule, (vmem_budget_bytes // max(per_row, 1)) // granule * granule)
    quarter = pl.cdiv(pl.cdiv(B, 4), granule) * granule   # ceil(B/4) to granule
    bt = min(cap, max(granule, quarter), 256)
    return max(granule, (bt // granule) * granule)


def attn_forward(method, hidden, encoder_outputs, params=None, *,
                 compute_dtype=jnp.float32, vmem_budget_bytes=40 << 20):
    """hidden: (1, B, H); encoder_outputs: (T, B, H). Returns (B, 1, T)."""
    if method not in ("dot", "general", "concat"):
        raise ValueError(method, "is not an appropriate attention method.")

    T, B, H = encoder_outputs.shape
    hid = hidden.reshape(B, H).astype(jnp.float32)
    enc = encoder_outputs.astype(compute_dtype)          # stays (T, B, H): no relayout

    we_t = v = None
    if method == "dot":
        hid_vec = hid
    elif method == "general":
        # Fold the Linear onto hidden (tiny (B,H)@(H,H) XLA op). The dropped
        # h.b offset is constant per row over T, so softmax is unchanged.
        hid_vec = hid @ params["attn_w"].astype(jnp.float32)
    else:  # concat
        w = params["attn_w"].astype(jnp.float32)          # (H, 2H) torch layout
        b = params["attn_b"].reshape(1, H).astype(jnp.float32)
        hid_vec = hid @ jnp.transpose(w[:, :H]) + b       # hidden half, once per row
        we_t = jnp.transpose(w[:, H:]).astype(compute_dtype)   # (H_in, H_out)
        v = params["v"].reshape(1, H).astype(jnp.float32)

    itemsize = jnp.dtype(compute_dtype).itemsize
    granule = 8 if itemsize >= 4 else (16 if itemsize == 2 else 32)
    bt = _pick_b_tile(B, T, H, itemsize, granule, vmem_budget_bytes)
    n_blk = pl.cdiv(B, bt)
    b_pad = n_blk * bt
    if b_pad != B:
        # Pad the batch (cheap vs. a full (T,B,H) relayout); padded rows are
        # computed harmlessly (zeros -> finite scores) and sliced off below.
        hid_vec = jnp.pad(hid_vec, ((0, b_pad - B), (0, 0)))
        enc = jnp.pad(enc, ((0, 0), (0, b_pad - B), (0, 0)))

    grid = (n_blk,)
    hid_spec = pl.BlockSpec((bt, H), lambda i: (i, 0))
    enc_spec = pl.BlockSpec((T, bt, H), lambda i: (0, i, 0))
    out_spec = pl.BlockSpec((bt, T), lambda i: (i, 0))      # full T on lanes
    out_shape = jax.ShapeDtypeStruct((b_pad, T), jnp.float32)

    enc_tile = T * bt * H * itemsize
    f32_tile = T * bt * H * 4
    vmem_limit = int(min(max(2 * enc_tile + 3 * f32_tile + (8 << 20), 32 << 20),
                         56 << 20))
    cparams = pltpu.CompilerParams(dimension_semantics=("parallel",),
                                   vmem_limit_bytes=vmem_limit)

    if method in ("dot", "general"):
        attn = pl.pallas_call(
            _dot_kernel, grid=grid,
            in_specs=[hid_spec, enc_spec], out_specs=out_spec,
            out_shape=out_shape, compiler_params=cparams,
        )(hid_vec, enc)
    else:
        rep = lambda i: (0, 0)                              # replicated parameter blocks
        attn = pl.pallas_call(
            _concat_kernel, grid=grid,
            in_specs=[hid_spec, enc_spec,
                      pl.BlockSpec((H, H), rep), pl.BlockSpec((1, H), rep)],
            out_specs=out_spec, out_shape=out_shape, compiler_params=cparams,
        )(hid_vec, enc, we_t, v)

    return attn[:B, None, :]                                # (B, 1, T) == .unsqueeze(1)


def _reference_attn(method, hidden, encoder_outputs, params=None):
    """Pure-JAX replica of the PyTorch Attn.forward."""
    if method == "dot":
        energies = jnp.sum(hidden * encoder_outputs, axis=2)                 # (T, B)
    elif method == "general":
        energy = encoder_outputs @ params["attn_w"].T + params["attn_b"]
        energies = jnp.sum(hidden * energy, axis=2)
    else:  # concat
        hid_exp = jnp.broadcast_to(hidden, encoder_outputs.shape)
        cat = jnp.concatenate([hid_exp, encoder_outputs], axis=2)            # (T, B, 2H)
        energy = jnp.tanh(cat @ params["attn_w"].T + params["attn_b"])
        energies = jnp.sum(params["v"] * energy, axis=2)
    return jax.nn.softmax(energies.T, axis=1)[:, None, :]                    # (B, 1, T)


if __name__ == "__main__":
    def make_inputs(key, T, B, H):
        k_h, k_e, k_w1, k_b1, k_w2, k_b2, k_v = jax.random.split(key, 7)
        hidden = jax.random.normal(k_h, (1, B, H), jnp.float32)
        enc = jax.random.normal(k_e, (T, B, H), jnp.float32)
        bound = 1.0 / float(H) ** 0.5
        params = {
            "dot": None,
            "general": {
                "attn_w": jax.random.uniform(k_w1, (H, H), jnp.float32, -bound, bound),
                "attn_b": jax.random.uniform(k_b1, (H,), jnp.float32, -bound, bound),
            },
            "concat": {
                "attn_w": jax.random.uniform(k_w2, (H, 2 * H), jnp.float32, -bound, bound),
                "attn_b": jax.random.uniform(k_b2, (H,), jnp.float32, -bound, bound),
                "v": jax.random.normal(k_v, (H,), jnp.float32),
            },
        }
        return hidden, enc, params

    key = jax.random.PRNGKey(0)
    k1, k2 = jax.random.split(key)

    # (T, B, H): an evenly tiled case and a case that exercises batch padding.
    for (T, B, H), kk in (((16, 16, 32), k1), ((24, 12, 32), k2)):
        hidden, enc, params = make_inputs(kk, T, B, H)
        for method in ("dot", "general", "concat"):
            out = jax.block_until_ready(
                attn_forward(method, hidden, enc, params[method]))
            ref = _reference_attn(method, hidden, enc, params[method])
            assert out.shape == (B, 1, T), (method, out.shape)
            assert jnp.allclose(out, ref, atol=2e-5, rtol=2e-5), (method, T, B, H)

    # Optional bf16 HBM/MXU path (v6e/v7x feedback); softmax stays f32.
    hidden, enc, params = make_inputs(k1, 16, 32, 32)
    for method in ("general", "concat"):
        out = jax.block_until_ready(
            attn_forward(method, hidden, enc, params[method],
                         compute_dtype=jnp.bfloat16))
        ref = _reference_attn(method, hidden, enc, params[method])
        assert bool(jnp.all(jnp.isfinite(out)))
        assert jnp.allclose(jnp.sum(out, axis=-1), 1.0, atol=1e-3), (method, "bf16 rowsum")
        assert jnp.allclose(out, ref, atol=5e-2, rtol=5e-2), (method, "bf16")

    print("KERNEL_OK")
</pallas_src>

<mosaic_0001>
module attributes {stable_mosaic.version = 11 : i64} {
  func.func @_dot_kernel(%arg0: i32, %arg1: memref<8x32xf32, #tpu.memory_space<vmem>>, %arg2: memref<16x8x32xf32, #tpu.memory_space<vmem>>, %arg3: memref<8x16xf32, #tpu.memory_space<vmem>>) attributes {dimension_semantics = [#tpu.dimension_semantics<parallel>], iteration_bounds = array<i64: 2>, scalar_prefetch = 0 : i64, scratch_operands = 0 : i64, tpu.core_type = #tpu.core_type<tc>, window_params = [{transform_indices = @transform_0, window_bounds = array<i64: 8, 32>}, {transform_indices = @transform_1, window_bounds = array<i64: 16, 8, 32>}, {transform_indices = @transform_2, window_bounds = array<i64: 8, 16>}]} {
    %c0 = arith.constant 0 : index
    %c0_0 = arith.constant 0 : index
    %0 = vector.load %arg1[%c0, %c0_0] : memref<8x32xf32, #tpu.memory_space<vmem>>, vector<8x32xf32>
    %c0_1 = arith.constant 0 : index
    %c0_2 = arith.constant 0 : index
    %c0_3 = arith.constant 0 : index
    %1 = vector.load %arg2[%c0_1, %c0_2, %c0_3] : memref<16x8x32xf32, #tpu.memory_space<vmem>>, vector<16x8x32xf32>
    %2 = vector.shape_cast %0 : vector<8x32xf32> to vector<1x8x32xf32>
    %3 = vector.broadcast %2 : vector<1x8x32xf32> to vector<16x8x32xf32>
    %4 = arith.mulf %1, %3 : vector<16x8x32xf32>
    %cst = arith.constant dense<0.000000e+00> : vector<16x8xf32>
    %5 = vector.multi_reduction <add>, %4, %cst [2] : vector<16x8x32xf32> to vector<16x8xf32>
    %6 = tpu.transpose %5, [1, 0] : vector<16x8xf32> -> vector<8x16xf32>
    %cst_4 = arith.constant dense<0xFF800000> : vector<8xf32>
    %7 = vector.multi_reduction <maximumf>, %6, %cst_4 [1] : vector<8x16xf32> to vector<8xf32>
    %8 = vector.shape_cast %7 : vector<8xf32> to vector<8x1xf32>
    %9 = vector.broadcast %8 : vector<8x1xf32> to vector<8x16xf32>
    %10 = arith.subf %6, %9 : vector<8x16xf32>
    %11 = math.exp %10 : vector<8x16xf32>
    %cst_5 = arith.constant dense<0.000000e+00> : vector<8xf32>
    %12 = vector.multi_reduction <add>, %11, %cst_5 [1] : vector<8x16xf32> to vector<8xf32>
    %13 = vector.shape_cast %12 : vector<8xf32> to vector<8x1xf32>
    %14 = vector.broadcast %13 : vector<8x1xf32> to vector<8x16xf32>
    %15 = arith.divf %11, %14 : vector<8x16xf32>
    %c0_6 = arith.constant 0 : index
    %c0_7 = arith.constant 0 : index
    %16 = vector.load %arg3[%c0_6, %c0_7] : memref<8x16xf32, #tpu.memory_space<vmem>>, vector<8x16xf32>
    tpu.vector_store %arg3[%c0_6, %c0_7], %15 {strides = array<i32>} : memref<8x16xf32, #tpu.memory_space<vmem>>, vector<8x16xf32>,
    return
  }
  func.func @transform_0(%arg0: i32) -> (i32, i32) {
    %c0_i32 = arith.constant 0 : i32
    %c0_i32_0 = arith.constant 0 : i32
    return %arg0, %c0_i32 : i32, i32
  }
  func.func @transform_1(%arg0: i32) -> (i32, i32, i32) {
    %c0_i32 = arith.constant 0 : i32
    %c0_i32_0 = arith.constant 0 : i32
    %c0_i32_1 = arith.constant 0 : i32
    return %c0_i32, %arg0, %c0_i32_0 : i32, i32, i32
  }
  func.func @transform_2(%arg0: i32) -> (i32, i32) {
    %c0_i32 = arith.constant 0 : i32
    %c0_i32_0 = arith.constant 0 : i32
    return %arg0, %c0_i32 : i32, i32
  }
}

</mosaic_0001>

<bundles_post_ra>
// kernel: tpu_custom_call.1
= control target key start
LH: loop header
LB: loop body
LE: loop exit
PB: predicated region body
PF: predicated region fallthrough
CT: control target
= control target key end

     0   :  { %7 = vsyncpa [#allocation3], 0  ;;  %s1032_s0 = inlined_call_operand.hbm [shape: f32[16,32], index: 0, kind: input, shape index: {}]   ;;  %s1033_s1 = inlined_call_operand.hbm [shape: f32[16,16,32], index: 1, kind: input, shape index: {}]   ;;  %s1034_s2 = inlined_call_operand.hbm [shape: f32[16,16], index: 2, kind: output, shape index: {}]  }
   0x1   :  { %9 = vsyncpa [#allocation3 + $0x1], 0 }
   0x2   :  { %10 = vsyncpa [#allocation6], 0 }
   0x3   :  { %12 = vsyncpa [#allocation6 + $0x1], 0 }
   0x4   :  { %13 = vsyncpa [#allocation4], 0 }
   0x5   :  { %15 = vsyncpa [#allocation4 + $0x1], 0  ;;  %s764_s9 = smov 0   ;;  %s766_s10 = smov 0  }
   0x6   :  { %s768_s11 = smov 0   ;;  %s770_s12 = smov 0  }
   0x7 LB: > { %s785_s13 = sadd.s32 4294967295, %s741_s12   ;;  %s537_s14 = sadd.s32 4294967294, %s741_s12   ;;  %s741_s12 = sphi %s770_s12, %s1050_s12   ;;  %s737_s11 = sphi %s768_s11, %s1049_s11   ;;  %s733_s10 = sphi %s766_s10, %s1048_s10   ;;  %s729_s9 = sphi %s764_s9, %s1047_s9  }
   0x8   : > { %s789_s15 = sadd.s32 1, %s741_s12   ;;  %s28_s16 = sadd.s32 1, %s737_s11 }
   0x9   : > { %s25_s17 = ssub.s32 %s741_s12, %s789_s15  ;;  %p35_p0 = scmp.ne.s32.totalorder %s737_s11, %s733_s10 }
   0xa   : > { %p26_p1 = scmp.eq.s32.totalorder %s25_s17, 0  ;;  %p36_p2 = scmp.eq.s32.totalorder %s741_s12, 0 }
   0xb   : > { %p41_p3 = scmp.ne.s32.totalorder %s733_s10, %s729_s9  ;;  %p42_p4 = scmp.eq.s32.totalorder %s785_s13, 0 }
   0xc   : > { %s801_s18 = scalar_select %p26_p1, %s737_s11, %s28_s16  }
   0xd   : > { %p803_p5 = por %p36_p2, %p35_p0  ;;  %p807_p6 = por %p42_p4, %p41_p3 }
   0xe   : > { %p91_p7 = scmp.eq.s32.totalorder %s785_s13, 1  ;;  %p97_p8 = scmp.eq.s32.totalorder %s537_s14, 1 }
   0xf   : > { %s1038_s20 = scalar_select %p807_p6, 1, 0 }
  0x10   : > { %p569_p10 = scmp.lt.s32.totalorder %s741_s12, 2  ;;  %p814_p11 = por %p91_p7, %p35_p0 }
  0x11   : > { %p818_p12 = por %p97_p8, %p41_p3  ;;  %s823_s23 = sand.u32 1, %s737_s11  }
  0x12   : > { %s1039_s21 = scalar_select %p814_p11, 1, 0 }
  0x13   : > { %s1040_s22 = scalar_select %p818_p12, 1, 0 }
  0x14   : > { %s541_s24 = sshll.u32 %s741_s12, 7  ;;  %s540_s25 = sshll.u32 %s823_s23, 3 }
  0x15   : > { %s832_s28 = scalar_lea.hbm %s1032_s0, %s541_s24  ;;  %s121_s29 = scalar_lea.vmem [#allocation2], %s540_s25 }
  0x16   : > { %s128_s30 = sshll.u32 %s121_s29, 4  ;;  %p836_p13 = pnand %p569_p10, %p803_p5  ;;  %s840_s30 = int_to_ptr.vmem [resolvable:$true] %s128_s30 }
  0x17   : > { %s542_s4 = sshll.u32 %s823_s23, 7  ;;  %s118_s5 = scalar_lea.sflag [#allocation3], %s823_s23 }
  0x18   : > { %s611_s6 = scalar_lea.hbm %s832_s28, 128  ;;  %p613_p1 = pneg %p836_p13 }
  0x19   : > { %p612_p0 = scmp.ne.s32.totalorder %s832_s28, %s611_s6  ;;  %s616_s14 = scalar_lea.hbm %s1032_s0, 256 }
  0x1a   : > { %p617_p4 = scmp.lt.u32.totalorder %s832_s28, %s1032_s0  ;;  %p618_p5 = scmp.lt.u32.totalorder %s616_s14, %s611_s6 }
  0x1b   : > { %p614_p2 = pnand %p613_p1, %p612_p0  ;;  %p620_p8 = scmp.lt.u32.totalorder %s611_s6, %s832_s28 }
  0x1c   : > { %p619_p7 = por %p618_p5, %p617_p4 }
  0x1d   : > { %p615_p3 = pneg %p614_p2 }
  0x1e   : > { %p621_p10 = por %p620_p8, %p619_p7 }
  0x20   : > { %p622_p9 = pnand %p621_p10, %p615_p3 }
  0x22   : > { %625 = shalt.err (!%p622_p9)
}
  0x23   : > { %s626_s19 = scalar_lea.vmem %s840_s30, 128  ;;  %s743_s25 = smov [#allocation2]  }
  0x24   : > { %p627_p0 = scmp.ne.s32.totalorder %s840_s30, %s626_s19  ;;  %s631_s26 = sshll.u32 %s743_s25, 4  ;;  %s632_s26 = int_to_ptr.vmem [resolvable:$false] %s631_s26 }
  0x25   : > { %s633_s27 = scalar_lea.vmem %s632_s26, 256  ;;  %p634_p11 = scmp.lt.s32.totalorder %s840_s30, %s632_s26 }
  0x26   : > { %p629_p2 = pnand %p627_p0, %p613_p1  ;;  %p635_p4 = scmp.lt.s32.totalorder %s633_s27, %s626_s19 }
  0x28   : > { %p630_p12 = pneg %p629_p2  ;;  %p636_p5 = por %p635_p4, %p634_p11 }
  0x2a   : > { %p637_p7 = pnand %p636_p5, %p630_p12 }
  0x2c   : > { %640 = shalt.err (!%p637_p7)
}
  0x2d   : > { %561 = dma.hbm_to_vmem [thread:$0]  (!%p836_p13), %s832_s28, 128, %s840_s30, %s118_s5  }
  0x2e   : > { %s874_s7 = scalar_lea.hbm %s1033_s1, %s541_s24  ;;  %p544_p9 = scmp.ge.s32.totalorder %s741_s12, 1 }
  0x2f   : > { %p153_p11 = scmp.lt.s32.totalorder %s741_s12, 3  ;;  %s139_s8 = scalar_lea.vmem [#allocation5], %s542_s4 }
  0x30   : > { %s145_s14 = sshll.u32 %s139_s8, 4  ;;  %s136_s28 = scalar_lea.sflag [#allocation6], %s823_s23  ;;  %s884_s14 = int_to_ptr.vmem [resolvable:$true] %s145_s14 }
  0x31   : > { %p880_p12 = pnand %p544_p9, %p153_p11  ;;  %s641_s30 = scalar_lea.hbm %s874_s7, 2048 }
  0x32   : > { %p642_p3 = scmp.ne.s32.totalorder %s874_s7, %s641_s30  ;;  %s646_s17 = scalar_lea.hbm %s1033_s1, 4096 }
  0x33   : > { %p647_p0 = scmp.lt.u32.totalorder %s874_s7, %s1033_s1  ;;  %p648_p2 = scmp.lt.u32.totalorder %s646_s17, %s641_s30 }
  0x34   : > { %p644_p8 = pnand %p642_p3, %p613_p1  ;;  %p650_p5 = scmp.lt.u32.totalorder %s641_s30, %s874_s7 }
  0x35   : > { %p649_p4 = por %p648_p2, %p647_p0 }
  0x36   : > { %p645_p10 = pneg %p644_p8 }
  0x37   : > { %p651_p7 = por %p650_p5, %p649_p4 }
  0x39   : > { %p652_p9 = pnand %p651_p7, %p645_p10 }
  0x3b   : > { %655 = shalt.err (!%p652_p9)
}
  0x3c   : > { %s656_s25 = scalar_lea.vmem %s884_s14, 2048  ;;  %s744_s26 = smov [#allocation5]  }
  0x3d   : > { %p657_p11 = scmp.ne.s32.totalorder %s884_s14, %s656_s25  ;;  %s661_s27 = sshll.u32 %s744_s26, 4  ;;  %s662_s27 = int_to_ptr.vmem [resolvable:$false] %s661_s27 }
  0x3e   : > { %s663_s29 = scalar_lea.vmem %s662_s27, 4096  ;;  %p664_p6 = scmp.lt.s32.totalorder %s884_s14, %s662_s27 }
  0x3f   : > { %p659_p3 = pnand %p657_p11, %p613_p1  ;;  %p665_p0 = scmp.lt.s32.totalorder %s663_s29, %s656_s25 }
  0x41   : > { %p660_p8 = pneg %p659_p3  ;;  %p666_p2 = por %p665_p0, %p664_p6 }
  0x43   : > { %p667_p4 = pnand %p666_p2, %p660_p8 }
  0x45   : > { %670 = shalt.err (!%p667_p4)
}
  0x46   : > { %s745_s6 = smov 256   ;;  %s746_s8 = smov 128  }
  0x47   : > { %s747_s30 = smov 8   ;;  %157 = sbr.rel (%p880_p12) target bundleno = 713 (0x2c9), region = 28 }
  0x48   : > { %564 = dma.hbm_to_vmem [thread:$0]  (!%p836_p13), %s874_s7, 2048, %s884_s14, %s136_s28, %s745_s6, %s746_s8, %s747_s30  }
  0x49   : > { %s915_s24 = sand.u32 (!%p880_p12), 1, %s733_s10   ;;  %p1043_p6 = scmp.ne.s32.totalorder (!%p880_p12), %s1038_s20, 0 }
  0x4a   : > { %s545_s5 = sshll.u32 (!%p880_p12), %s915_s24, 3  ;;  %s160_s17 = scalar_lea.sflag (!%p880_p12), [#allocation3], %s915_s24 }
  0x4b   : > { %s163_s19 = scalar_lea.vmem (!%p880_p12), [#allocation2], %s545_s5 }
  0x4e   : > { %716 = dma.done.wait (%p1043_p6), %s160_s17, 128  }
  0x4f   : > { %718 = vsyncadd (%p1043_p6), %s160_s17, 4294967168  ;;  %s546_s23 = sshll.u32 %s915_s24, 7  ;;  %s169_s3 = scalar_lea.sflag [#allocation6], %s915_s24 }
  0x50   : > { %s927_s7 = scalar_lea.vmem [#allocation5], %s546_s23 }
  0x51   : > { %720 = dma.done.wait (%p1043_p6), %s169_s3, 2048  }
  0x52   : > { %722 = vsyncadd (%p1043_p6), %s169_s3, 4294965248  ;;  %v198_v0 = vld [vmem:[%s163_s19] sm:$0xff]  ;;  %vm231_vm0 = vcmask 261120   ;;  %v199_v2 = vld [vmem:[%s927_s7] sm:$0xff]  ;;  %v296_v51 = vlaneseq  ;;  %vm362_vm1 = vcmask 1041409   ;;  %vm364_vm2 = vcmask 1042434  }
  0x53   : > { %v201_v1 = vld [vmem:[%s927_s7 + $0x10] sm:$0xff]  ;;  %v215_v4 = vmul.f32 %v199_v2, %v198_v0  ;;  %v202_v5 = vld [vmem:[%s927_s7 + $0x18] sm:$0xff]  ;;  %v200_v6 = vld [vmem:[%s927_s7 + $0x8] sm:$0xff]  ;;  %vm366_vm3 = vcmask 1043459   ;;  %vm368_vm4 = vcmask 1044484   ;;  %vm370_vm5 = vcmask 1045509  }
  0x54   : > { %v217_v3 = vmul.f32 %v201_v1, %v198_v0  ;;  %v218_v7 = vmul.f32 %v202_v5, %v198_v0  ;;  %v216_v8 = vmul.f32 %v200_v6, %v198_v0  ;;  %v208_v9 = vld [vmem:[%s927_s7 + $0x48] sm:$0xff]  ;;  %v207_v10 = vld [vmem:[%s927_s7 + $0x40] sm:$0xff]  ;;  %v209_v17 = vld [vmem:[%s927_s7 + $0x50] sm:$0xff]  ;;  %v297_v54 = vand.u32 127, %v296_v51  ;;  %s549_s20 = sshll.u32 %s785_s13, 7  ;;  %s197_s14 = scalar_lea.vmem [#allocation7], %s545_s5 }
  0x55   : > { %v232_v12 = vsel %vm231_vm0, %v215_v4, 0.0  ;;  %v224_v15 = vmul.f32 %v208_v9, %v198_v0  ;;  %v223_v16 = vmul.f32 %v207_v10, %v198_v0  ;;  %v203_v18 = vld [vmem:[%s927_s7 + $0x20] sm:$0xff]  ;;  %v225_v21 = vmul.f32 %v209_v17, %v198_v0  ;;  %v210_v23 = vld [vmem:[%s927_s7 + $0x58] sm:$0xff]  ;;  %v204_v24 = vld [vmem:[%s927_s7 + $0x28] sm:$0xff]  ;;  %s444_s16 = sshll.u32 %s197_s14, 4  ;;  %s987_s25 = scalar_lea.hbm %s1034_s2, %s549_s20  ;;  %s989_s16 = int_to_ptr.vmem [resolvable:$true] %s444_s16 }
  0x56   : > { %v238_v11 = vsel %vm231_vm0, %v217_v3, 0.0  ;;  %233 = vadd.xlane.f32.xlu0 %v232_v12  ;;  %v241_v13 = vsel %vm231_vm0, %v218_v7, 0.0  ;;  %v235_v14 = vsel %vm231_vm0, %v216_v8, 0.0  ;;  %v219_v22 = vmul.f32 %v203_v18, %v198_v0  ;;  %v211_v29 = vld [vmem:[%s927_s7 + $0x60] sm:$0xff]  ;;  %v205_v30 = vld [vmem:[%s927_s7 + $0x30] sm:$0xff]  ;;  %v212_v35 = vld [vmem:[%s927_s7 + $0x68] sm:$0xff] }
  0x57   : > { %239 = vadd.xlane.f32.xlu1 %v238_v11  ;;  %v259_v19 = vsel %vm231_vm0, %v224_v15, 0.0  ;;  %v256_v20 = vsel %vm231_vm0, %v223_v16, 0.0  ;;  %v262_v25 = vsel %vm231_vm0, %v225_v21, 0.0  ;;  %v226_v27 = vmul.f32 %v210_v23, %v198_v0  ;;  %v206_v36 = vld [vmem:[%s927_s7 + $0x38] sm:$0xff]  ;;  %v213_v41 = vld [vmem:[%s927_s7 + $0x70] sm:$0xff]  ;;  %s431_s26 = scalar_lea.sflag [#allocation4], %s915_s24 }
  0x58   : > { %v244_v26 = vsel %vm231_vm0, %v219_v22, 0.0  ;;  %v220_v28 = vmul.f32 %v204_v24, %v198_v0  ;;  %v227_v33 = vmul.f32 %v211_v29, %v198_v0  ;;  %v221_v34 = vmul.f32 %v205_v30, %v198_v0  ;;  %v214_v42 = vld [vmem:[%s927_s7 + $0x78] sm:$0xff]  ;;  %s671_s27 = scalar_lea.vmem %s989_s16, 128  ;;  %p1044_p1 = scmp.ne.s32.totalorder %s1039_s21, 0 }
  0x59   : > { %v265_v31 = vsel %vm231_vm0, %v226_v27, 0.0  ;;  %v228_v39 = vmul.f32 %v212_v35, %v198_v0  ;;  %v222_v40 = vmul.f32 %v206_v36, %v198_v0  ;;  %v229_v45 = vmul.f32 %v213_v41, %v198_v0  ;;  %p672_p13 = scmp.ne.s32.totalorder %s989_s16, %s671_s27  ;;  %s748_s13 = smov [#allocation7]  }
  0x5a   : > { %236 = vadd.xlane.f32.xlu0 %v235_v14  ;;  %v247_v32 = vsel %vm231_vm0, %v220_v28, 0.0  ;;  %v268_v37 = vsel %vm231_vm0, %v227_v33, 0.0  ;;  %v250_v38 = vsel %vm231_vm0, %v221_v34, 0.0  ;;  %v230_v46 = vmul.f32 %v214_v42, %v198_v0  ;;  %s675_s29 = sshll.u32 %s748_s13, 4  ;;  %s676_s29 = int_to_ptr.vmem [resolvable:$false] %s675_s29 }
  0x5b   : > { %242 = vadd.xlane.f32.xlu1 %v241_v13  ;;  %v271_v43 = vsel %vm231_vm0, %v228_v39, 0.0  ;;  %v253_v44 = vsel %vm231_vm0, %v222_v40, 0.0  ;;  %v274_v47 = vsel %vm231_vm0, %v229_v45, 0.0  ;;  %v299_v55 = vshrl.u32 %v296_v51, 7  ;;  %p673_p12 = pnand %p672_p13, %p1044_p1  ;;  %s677_s6 = scalar_lea.vmem %s676_s29, 256 }
  0x5c   : > { %v277_v48 = vsel %vm231_vm0, %v230_v46, 0.0  ;;  %vm372_vm6 = vcmask 1046534   ;;  %vm374_vm7 = vcmask 1047559   ;;  %vm417_vm8 = vcmask 130048   ;;  %p678_p5 = scmp.lt.s32.totalorder %s989_s16, %s676_s29  ;;  %p679_p7 = scmp.lt.s32.totalorder %s677_s6, %s671_s27 }
  0x5d   : > { %v300_v58 = vsub.s32 %v297_v54, %v299_v55  ;;  %p674_p10 = pneg %p673_p12 }
  0x5e   : > { %257 = vadd.xlane.f32.xlu0 %v256_v20  ;;  %p680_p9 = por %p679_p7, %p678_p5 }
  0x5f   : > { %260 = vadd.xlane.f32.xlu1 %v259_v19 }
  0x60   : > { %p681_p11 = pnand %p680_p9, %p674_p10 }
  0x62   : > { %245 = vadd.xlane.f32.xlu0 %v244_v26 }
  0x63   : > { %263 = vadd.xlane.f32.xlu1 %v262_v25 }
  0x66   : > { %248 = vadd.xlane.f32.xlu0 %v247_v32 }
  0x67   : > { %266 = vadd.xlane.f32.xlu1 %v265_v31 }
  0x6a   : > { %251 = vadd.xlane.f32.xlu0 %v250_v38 }
  0x6b   : > { %269 = vadd.xlane.f32.xlu1 %v268_v37 }
  0x6e   : > { %254 = vadd.xlane.f32.xlu0 %v253_v44 }
  0x6f   : > { %272 = vadd.xlane.f32.xlu1 %v271_v43 }
  0x72   : > { %275 = vadd.xlane.f32.xlu0 %v274_v47 }
  0x73   : > { %278 = vadd.xlane.f32.xlu1 %v277_v48 }
  0xe3   : > { %v234_v50 = vpop.xlane.xlu0 %233 }
  0xe4   : > { %v240_v49 = vpop.xlane.xlu1 %239  ;;  %v301_v62 = vrot.slane %v234_v50, %v300_v58 }
  0xe5   : > { %v309_v2 = vrot.slane %v240_v49, %v300_v58 }
  0xe7   : > { %v237_v53 = vpop.xlane.xlu0 %236 }
  0xe8   : > { %v243_v52 = vpop.xlane.xlu1 %242  ;;  %v305_v61 = vrot.slane %v237_v53, %v300_v58 }
  0xe9   : > { %v313_v3 = vrot.slane %v243_v52, %v300_v58 }
  0xea   : > { %v363_v1 = vsel %vm362_vm1, %v305_v61, %v301_v62 }
  0xeb   : > { %v258_v57 = vpop.xlane.xlu0 %257  ;;  %v365_v4 = vsel %vm364_vm2, %v309_v2, %v363_v1 }
  0xec   : > { %v261_v56 = vpop.xlane.xlu1 %260  ;;  %v333_v10 = vrot.slane %v258_v57, %v300_v58  ;;  %v367_v13 = vsel %vm366_vm3, %v313_v3, %v365_v4 }
  0xed   : > { %v337_v9 = vrot.slane %v261_v56, %v300_v58 }
  0xef   : > { %v246_v60 = vpop.xlane.xlu0 %245  ;;  %v376_v21 = vsel %vm362_vm1, %v337_v9, %v333_v10 }
  0xf0   : > { %v264_v59 = vpop.xlane.xlu1 %263  ;;  %v317_v5 = vrot.slane %v246_v60, %v300_v58 }
  0xf1   : > { %v341_v12 = vrot.slane %v264_v59, %v300_v58 }
  0xf2   : > { %v369_v14 = vsel %vm368_vm4, %v317_v5, %v367_v13 }
  0xf3   : > { %v249_v0 = vpop.xlane.xlu0 %248  ;;  %v377_v24 = vsel %vm364_vm2, %v341_v12, %v376_v21 }
  0xf4   : > { %v267_v63 = vpop.xlane.xlu1 %266  ;;  %v321_v8 = vrot.slane %v249_v0, %v300_v58 }
  0xf5   : > { %v345_v15 = vrot.slane %v267_v63, %v300_v58 }
  0xf6   : > { %v371_v20 = vsel %vm370_vm5, %v321_v8, %v369_v14 }
  0xf7   : > { %v252_v7 = vpop.xlane.xlu0 %251  ;;  %v378_v26 = vsel %vm366_vm3, %v345_v15, %v377_v24 }
  0xf8   : > { %v270_v6 = vpop.xlane.xlu1 %269  ;;  %v325_v11 = vrot.slane %v252_v7, %v300_v58 }
  0xf9   : > { %v349_v18 = vrot.slane %v270_v6, %v300_v58 }
  0xfa   : > { %v373_v23 = vsel %vm372_vm6, %v325_v11, %v371_v20 }
  0xfb   : > { %v255_v17 = vpop.xlane.xlu0 %254  ;;  %v379_v29 = vsel %vm368_vm4, %v349_v18, %v378_v26 }
  0xfc   : > { %v273_v16 = vpop.xlane.xlu1 %272  ;;  %v329_v19 = vrot.slane %v255_v17, %v300_v58 }
  0xfd   : > { %v353_v22 = vrot.slane %v273_v16, %v300_v58 }
  0xfe   : > { %v375_v25 = vsel %vm374_vm7, %v329_v19, %v373_v23 }
  0xff   : > { %385 = vxpose.xlu0.b32.start [1/2] (short) (narrow) %v375_v25, 8  ;;  %v276_v27 = vpop.xlane.xlu0 %275  ;;  %v380_v32 = vsel %vm370_vm5, %v353_v22, %v379_v29 }
 0x100   : > { %v279_v28 = vpop.xlane.xlu1 %278  ;;  %v357_v30 = vrot.slane %v276_v27, %v300_v58 }
 0x101   : > { %v361_v31 = vrot.slane %v279_v28, %v300_v58 }
 0x102   : > { %v381_v33 = vsel %vm372_vm6, %v357_v30, %v380_v32 }
 0x103   : > { %v382_v34 = vsel %vm374_vm7, %v361_v31, %v381_v33 }
 0x104   : > { %386 = vxpose.xlu0.b32.end [2/2] (short) (narrow) %v382_v34, 8 }
 0x180   : > { %v401_v35 = vpop.trf.xlu0 }
 0x181   : > { %v418_v36 = vsel %vm417_vm8, %v401_v35, -inf }
 0x182   : > { %419 = vmax.xlane.f32.xlu1 %v418_v36 }
 0x20f   : > { %v420_v37 = vpop.xlane.xlu1 %419 }
 0x210   : > { %v421_v38 = vsub.f32 %v401_v35, %v420_v37 }
 0x212   : > { %v422_v39 = vmul.f32 1.442695, %v421_v38 }
 0x214   : > { %607 = vpow2.f32 %v422_v39 }
 0x21e   : > { %v608_v40 = vpop.eup %607 }
 0x21f   : > { %v424_v41 = vsel %vm417_vm8, %v608_v40, 0.0 }
 0x220   : > { %425 = vadd.xlane.f32.xlu1 %v424_v41 }
 0x2ad   : > { %v426_v42 = vpop.xlane.xlu1 %425 }
 0x2ae   : > { %609 = vrcp.f32 %v426_v42 }
 0x2b8   : > { %v610_v43 = vpop.eup %609 }
 0x2b9   : > { %v428_v44 = vmul.f32 %v610_v43, %v608_v40 }
 0x2bb   : > { %429 = vst.msk [vmem:[%s197_s14] sm:$0xff] %vm417_vm8, %v428_v44 }
 0x2bc   : > { %684 = shalt.err (!%p681_p11)
}
 0x2bd   : > { %s685_s8 = scalar_lea.hbm %s987_s25, 128  ;;  %s689_s5 = scalar_lea.hbm %s1034_s2, 256 }
 0x2be   : > { %p686_p3 = scmp.ne.s32.totalorder %s987_s25, %s685_s8  ;;  %p690_p2 = scmp.lt.u32.totalorder %s987_s25, %s1034_s2 }
 0x2bf   : > { %p691_p4 = scmp.lt.u32.totalorder %s689_s5, %s685_s8  ;;  %p693_p13 = scmp.lt.u32.totalorder %s685_s8, %s987_s25 }
 0x2c0   : > { %p687_p8 = pnand %p686_p3, %p1044_p1 }
 0x2c1   : > { %p692_p6 = por %p691_p4, %p690_p2 }
 0x2c2   : > { %p688_p0 = pneg %p687_p8 }
 0x2c3   : > { %p694_p12 = por %p693_p13, %p692_p6 }
 0x2c5   : > { %p695_p10 = pnand %p694_p12, %p688_p0 }
 0x2c7   : > { %698 = shalt.err (!%p695_p10)
}
 0x2c8   : > { %556 = dma.vmem_to_hbm [thread:$0]  (%p1044_p1), %s989_s16, 128, %s987_s25, %s431_s26  }
 0x2c9 PF: > { %s456_s23 = sand.u32 1, %s729_s9   ;;  %p1045_p5 = scmp.ne.s32.totalorder %s1040_s22, 0 }
 0x2ca   : > { %p1046_p7 = scmp.ge.s32.totalorder %s741_s12, 2  ;;  %s457_s3 = scalar_lea.sflag [#allocation4], %s456_s23 }
 0x2cc   : > { %p566_p9 = pnand %p1046_p7, %p1045_p5 }
 0x2ce   : > { %724 = dma.done.wait (!%p566_p9), %s457_s3, 128  }
 0x2cf   : > { %726 = vsyncadd (!%p566_p9), %s457_s3, 4294967168  ;;  %p18_p11 = scmp.ge.s32.totalorder %s789_s15, 4   ;;  %s1047_s9 = smov %s733_s10 }
 0x2d0   : > { %s1048_s10 = smov %s737_s11  ;;  %s1049_s11 = smov %s801_s18 }
 0x2d1   : > { %s1050_s12 = smov %s789_s15  ;;  %20 = sbr.rel (!%p18_p11) target bundleno = 7 (0x7), region = 86 }
 0x2d8   :  { %462 = vsyncpa [#allocation3], 1 }
 0x2d9   :  { %464 = vsyncpa [#allocation3 + $0x1], 1 }
 0x2da   :  { %465 = vsyncpa [#allocation6], 1 }
 0x2db   :  { %467 = vsyncpa [#allocation6 + $0x1], 1 }
 0x2dc   :  { %468 = vsyncpa [#allocation4], 1 }
 0x2dd   :  { %470 = vsyncpa [#allocation4 + $0x1], 1 }

</bundles_post_ra>
